<compile_context>
chip_gen: v7x
topology: tpu7x:2x2x1
jax: 0.10.0
libtpu: 0.0.40
codegen_flags: <defaults>
</compile_context>

<pallas_src>
import jax
import jax.numpy as jnp
from jax.experimental import pallas as pl
from jax.experimental.pallas import tpu as pltpu

C1 = 64    # conv1 out channels (unpadded -- nothing lane-sparse ever hits HBM)
C2 = 128   # conv2 out channels


# ----------------------------------------------------------------------------
# Single fused kernel: one batch tile of `bt` elements per grid step.
#   x_ref : (bt, L, Cin)      bf16, channels-last
#   w1_ref: (3*Cin, C1)       bf16  conv1 weight, im2col layout (tap-major)
#   s1/b1 : (1, C1)           f32   folded BN1 scale / bias
#   w2_ref: (3*C1, C2)        bf16  conv2 weight, im2col layout
#   s2/b2 : (1, C2)           f32   folded BN2 scale / bias
#   wf/bf : (C2, NC) / (1,NC) f32   FC params
#   out   : (1, bt, NC)       f32   softmax probabilities
#   y1/y2 : VMEM scratch for post-BN/ReLU activations (pooled via strided reads)
# ----------------------------------------------------------------------------
def fused_cnn_kernel(x_ref, w1_ref, s1_ref, b1_ref, w2_ref, s2_ref, b2_ref,
                     wf_ref, bf_ref, out_ref, y1_ref, y2_ref):
    bt, seq, cin = x_ref.shape
    c2 = s2_ref.shape[1]
    l2, l4 = seq // 2, seq // 4
    m1, m2, m4 = bt * seq, bt * l2, bt * l4

    # ---- Stage 1: Conv1d(k=3,p=1) as ONE bf16 im2col matmul + BN + ReLU ----
    x_bf = x_ref[...].reshape(m1, cin)                     # bf16, batch folded into M
    x32 = x_bf.astype(jnp.float32)
    pos = jax.lax.broadcasted_iota(jnp.int32, (bt, seq, 1), 1).reshape(m1, 1)
    # Shifted taps via XLU rolls; boundary masks also stop cross-batch leakage.
    x_m1 = jnp.where(pos == 0, 0.0, pltpu.roll(x32, shift=1, axis=0))            # x[l-1]
    x_p1 = jnp.where(pos == seq - 1, 0.0, pltpu.roll(x32, shift=m1 - 1, axis=0))  # x[l+1]
    im2col1 = jnp.concatenate(
        [x_m1.astype(jnp.bfloat16), x_bf, x_p1.astype(jnp.bfloat16)], axis=1)    # (m1, 3*cin)
    acc1 = jnp.dot(im2col1, w1_ref[...], preferred_element_type=jnp.float32)
    y1_ref[...] = jnp.maximum(acc1 * s1_ref[...] + b1_ref[...], 0.0)             # (m1, C1) f32

    # ---- MaxPool1d(2): stride-2 sublane reads from scratch (no reshape copy) --
    h1 = jnp.maximum(y1_ref[pl.ds(0, m2, 2), :], y1_ref[pl.ds(1, m2, 2), :])     # (m2, C1)

    # ---- Stage 2: Conv1d(k=3,p=1) as ONE bf16 im2col matmul (K=3*64) ---------
    pos2 = jax.lax.broadcasted_iota(jnp.int32, (bt, l2, 1), 1).reshape(m2, 1)
    h_m1 = jnp.where(pos2 == 0, 0.0, pltpu.roll(h1, shift=1, axis=0))
    h_p1 = jnp.where(pos2 == l2 - 1, 0.0, pltpu.roll(h1, shift=m2 - 1, axis=0))
    im2col2 = jnp.concatenate(
        [h_m1.astype(jnp.bfloat16), h1.astype(jnp.bfloat16),
         h_p1.astype(jnp.bfloat16)], axis=1)                                     # (m2, 3*C1)
    acc2 = jnp.dot(im2col2, w2_ref[...], preferred_element_type=jnp.float32)
    y2_ref[...] = jnp.maximum(acc2 * s2_ref[...] + b2_ref[...], 0.0)             # (m2, C2) f32

    # ---- MaxPool1d(2) again ---------------------------------------------------
    h2 = jnp.maximum(y2_ref[pl.ds(0, m4, 2), :], y2_ref[pl.ds(1, m4, 2), :])     # (m4, C2)

    # ---- Head: global average pool + Linear + Softmax (same kernel) ----------
    pooled = jnp.sum(h2.reshape(bt, l4, c2), axis=1) * (1.0 / l4)                # (bt, C2)
    logits = jnp.dot(pooled, wf_ref[...],
                     preferred_element_type=jnp.float32) + bf_ref[...]
    mx = jnp.max(logits, axis=1, keepdims=True)
    e = jnp.exp(logits - mx)
    out_ref[0] = e * pl.reciprocal(jnp.sum(e, axis=1, keepdims=True), approx=True)


# ----------------------------------------------------------------------------
# Wrapper
# ----------------------------------------------------------------------------
def fold_bn(gamma, beta, mean, var, conv_bias, eps=1e-5):
    scale = gamma / jnp.sqrt(var + eps)
    bias = beta + (conv_bias - mean) * scale
    return scale[None, :], bias[None, :]


def _vmem_capacity_bytes():
    try:
        info = pltpu.get_tpu_info()
        for name in ("vmem_capacity_bytes", "vmem_size_bytes", "vmem_bytes"):
            cap = getattr(info, name, None)
            if cap:
                return int(cap)
    except Exception:
        pass
    return 128 * 1024 * 1024


def pick_batch_tile(b, seq, cin, step_cap_bytes):
    """Batch elements per grid step: largest divisor of b whose (flat-summed)
    per-step working set fits the cap, preferring an even number of grid
    steps (>= 2) so both v7x TensorCores stay busy."""
    l2, l4 = seq // 2, seq // 4
    per_elem = (seq * (2 * cin * 2            # double-buffered bf16 input block
                       + 2 * cin * 4          # two f32 tap slabs
                       + 3 * cin * 2          # bf16 im2col slab
                       + 2 * C1 * 4)          # f32 acc1 + y1 scratch
                + l2 * (3 * C1 * 4            # h1 + two f32 taps
                        + 3 * C1 * 2          # bf16 im2col slab
                        + 2 * C2 * 4)         # f32 acc2 + y2 scratch
                + l4 * C2 * 4)
    cap = max(1, step_cap_bytes // max(per_elem, 1))
    best, best_key = 1, None
    for d in range(1, b + 1):
        if b % d or d > cap:
            continue
        nb = b // d
        if nb < 2 and b > 1:
            continue
        key = (nb % 2 == 0, d)                # prefer even #steps, then bigger tile
        if best_key is None or key > best_key:
            best, best_key = d, key
    # TODO(synk): when b == 1 on v7x, split the sequence dim into >=2 parallel
    # chunks (with halo handling) so the second TensorCore is not idle.
    return best


def cnn_forward(x_ncl, p):
    """x_ncl: (B, C_in, L) in PyTorch Conv1d layout. Returns (B, num_classes)."""
    b, cin, seq = x_ncl.shape
    assert seq % 4 == 0, "seq_len must be divisible by 4 (two MaxPool1d(2))"
    nc = p["wf"].shape[1]

    # Channels-last + bf16 activation stream (one fused XLA transpose+cast).
    x = jnp.transpose(x_ncl, (0, 2, 1)).astype(jnp.bfloat16)

    s1, b1 = fold_bn(p["g1"], p["be1"], p["m1"], p["v1"], p["b1"])
    w1 = p["w1"].reshape(3 * cin, C1).astype(jnp.bfloat16)       # im2col layout
    s2, b2 = fold_bn(p["g2"], p["be2"], p["m2"], p["v2"], p["b2"])
    w2 = p["w2"].reshape(3 * C1, C2).astype(jnp.bfloat16)        # im2col layout
    wf = p["wf"].astype(jnp.float32)
    bf = p["bf"].astype(jnp.float32)

    vmem_cap = _vmem_capacity_bytes()          # 64 MiB (v7x) / 128 MiB (v5e, v6e)
    vmem_limit = max(32 * 1024 * 1024,
                     min(100 * 1024 * 1024, vmem_cap - 24 * 1024 * 1024))
    bt = pick_batch_tile(b, seq, cin, vmem_limit // 4)
    nb = b // bt

    flops = 2 * b * (seq * 3 * cin * C1 + (seq // 2) * 3 * C1 * C2 + C2 * nc)
    bytes_accessed = int(x.size * 2 + w1.size * 2 + w2.size * 2
                         + 4 * (s1.size + b1.size + s2.size + b2.size
                                + wf.size + bf.size + b * nc))

    out = pl.pallas_call(
        fused_cnn_kernel,
        out_shape=jax.ShapeDtypeStruct((nb, bt, nc), jnp.float32),
        grid=(nb,),
        in_specs=[
            pl.BlockSpec((bt, seq, cin), lambda i: (i, 0, 0)),
            pl.BlockSpec((3 * cin, C1), lambda i: (0, 0)),
            pl.BlockSpec((1, C1), lambda i: (0, 0)),
            pl.BlockSpec((1, C1), lambda i: (0, 0)),
            pl.BlockSpec((3 * C1, C2), lambda i: (0, 0)),
            pl.BlockSpec((1, C2), lambda i: (0, 0)),
            pl.BlockSpec((1, C2), lambda i: (0, 0)),
            pl.BlockSpec((C2, nc), lambda i: (0, 0)),
            pl.BlockSpec((1, nc), lambda i: (0, 0)),
        ],
        out_specs=pl.BlockSpec((1, bt, nc), lambda i: (i, 0, 0)),
        scratch_shapes=[
            pltpu.VMEM((bt * seq, C1), jnp.float32),        # stage-1 post-BN/ReLU
            pltpu.VMEM((bt * seq // 2, C2), jnp.float32),   # stage-2 post-BN/ReLU
        ],
        compiler_params=pltpu.CompilerParams(
            dimension_semantics=("parallel",),
            vmem_limit_bytes=vmem_limit),
        cost_estimate=pl.CostEstimate(
            flops=flops, transcendentals=b * (nc + 1),
            bytes_accessed=bytes_accessed),
    )(x, w1, s1, b1, w2, s2, b2, wf, bf)
    return out.reshape(b, nc)


# ----------------------------------------------------------------------------
# Parameter construction (random, deterministic).  Layout notes:
#   conv weight stored tap-major: w[k, ci, co] == torch_w[co, ci, k]
# ----------------------------------------------------------------------------
def make_params(key, in_channels, num_classes):
    ks = jax.random.split(key, 12)
    p = {}
    p["w1"] = jax.random.normal(ks[0], (3, in_channels, C1), jnp.float32) * 0.1
    p["b1"] = jax.random.normal(ks[1], (C1,), jnp.float32) * 0.1
    p["g1"] = 1.0 + 0.1 * jax.random.normal(ks[2], (C1,), jnp.float32)
    p["be1"] = 0.1 * jax.random.normal(ks[3], (C1,), jnp.float32)
    p["m1"] = 0.1 * jax.random.normal(ks[4], (C1,), jnp.float32)
    p["v1"] = 1.0 + 0.1 * jax.random.uniform(ks[5], (C1,), jnp.float32)
    p["w2"] = jax.random.normal(ks[6], (3, C1, C2), jnp.float32) * 0.05
    p["b2"] = jax.random.normal(ks[7], (C2,), jnp.float32) * 0.1
    p["g2"] = 1.0 + 0.1 * jax.random.normal(ks[8], (C2,), jnp.float32)
    p["be2"] = 0.1 * jax.random.normal(ks[9], (C2,), jnp.float32)
    p["m2"] = 0.1 * jax.random.normal(ks[10], (C2,), jnp.float32)
    p["v2"] = 1.0 + 0.1 * jax.random.uniform(ks[11], (C2,), jnp.float32)
    kf1, kf2 = jax.random.split(jax.random.fold_in(key, 99))
    p["wf"] = jax.random.normal(kf1, (C2, num_classes), jnp.float32) * 0.1
    p["bf"] = jax.random.normal(kf2, (1, num_classes), jnp.float32) * 0.1
    return p


if __name__ == "__main__":
    # Small shapes consistent with the module (scaled down from 90 ch / 1000 seq).
    B, C_IN, SEQ, NUM_CLASSES = 2, 8, 16, 2

    key = jax.random.PRNGKey(0)
    kx, kp = jax.random.split(key)
    x = jax.random.normal(kx, (B, C_IN, SEQ), jnp.float32)     # PyTorch NCL input
    params = make_params(kp, C_IN, NUM_CLASSES)

    out = jax.jit(cnn_forward)(x, params)
    out = jax.block_until_ready(out)

    assert out.shape == (B, NUM_CLASSES)
    # softmax rows sum to ~1 (approx-EUP reciprocal + bf16 matmuls)
    assert jnp.allclose(jnp.sum(out, axis=1), 1.0, atol=5e-3)
    print("KERNEL_OK")
</pallas_src>

<mosaic_0001>
module attributes {stable_mosaic.version = 11 : i64} {
  func.func @fused_cnn_kernel(%arg0: i32, %arg1: memref<1x16x8xbf16, #tpu.memory_space<vmem>>, %arg2: memref<24x64xbf16, #tpu.memory_space<vmem>>, %arg3: memref<1x64xf32, #tpu.memory_space<vmem>>, %arg4: memref<1x64xf32, #tpu.memory_space<vmem>>, %arg5: memref<192x128xbf16, #tpu.memory_space<vmem>>, %arg6: memref<1x128xf32, #tpu.memory_space<vmem>>, %arg7: memref<1x128xf32, #tpu.memory_space<vmem>>, %arg8: memref<128x2xf32, #tpu.memory_space<vmem>>, %arg9: memref<1x2xf32, #tpu.memory_space<vmem>>, %arg10: memref<1x1x2xf32, #tpu.memory_space<vmem>>, %arg11: memref<16x64xf32, #tpu.memory_space<vmem>>, %arg12: memref<8x128xf32, #tpu.memory_space<vmem>>) attributes {dimension_semantics = [#tpu.dimension_semantics<parallel>], iteration_bounds = array<i64: 2>, scalar_prefetch = 0 : i64, scratch_operands = 2 : i64, tpu.core_type = #tpu.core_type<tc>, window_params = [{transform_indices = @transform_0, window_bounds = array<i64: 1, 16, 8>}, {pipeline_mode = #tpu.pipeline_mode<synchronous>, transform_indices = @transform_1, window_bounds = array<i64: 24, 64>}, {pipeline_mode = #tpu.pipeline_mode<synchronous>, transform_indices = @transform_2, window_bounds = array<i64: 1, 64>}, {pipeline_mode = #tpu.pipeline_mode<synchronous>, transform_indices = @transform_3, window_bounds = array<i64: 1, 64>}, {pipeline_mode = #tpu.pipeline_mode<synchronous>, transform_indices = @transform_4, window_bounds = array<i64: 192, 128>}, {pipeline_mode = #tpu.pipeline_mode<synchronous>, transform_indices = @transform_5, window_bounds = array<i64: 1, 128>}, {pipeline_mode = #tpu.pipeline_mode<synchronous>, transform_indices = @transform_6, window_bounds = array<i64: 1, 128>}, {pipeline_mode = #tpu.pipeline_mode<synchronous>, transform_indices = @transform_7, window_bounds = array<i64: 128, 2>}, {pipeline_mode = #tpu.pipeline_mode<synchronous>, transform_indices = @transform_8, window_bounds = array<i64: 1, 2>}, {transform_indices = @transform_9, window_bounds = array<i64: 1, 1, 2>}]} {
    %c0 = arith.constant 0 : index
    %c0_0 = arith.constant 0 : index
    %c0_1 = arith.constant 0 : index
    %0 = vector.load %arg1[%c0, %c0_0, %c0_1] : memref<1x16x8xbf16, #tpu.memory_space<vmem>>, vector<1x16x8xbf16>
    %1 = vector.shape_cast %0 : vector<1x16x8xbf16> to vector<16x8xbf16>
    %2 = arith.extf %1 : vector<16x8xbf16> to vector<16x8xf32>
    %3 = tpu.iota {dimensions = array<i32: 1>} : vector<1x16x1xi32>
    %4 = vector.shape_cast %3 : vector<1x16x1xi32> to vector<16x1xi32>
    %c0_i32 = arith.constant 0 : i32
    %5 = vector.broadcast %c0_i32 : i32 to vector<16x1xi32>
    %6 = arith.cmpi eq, %4, %5 : vector<16x1xi32>
    %c1_i32 = arith.constant 1 : i32
    %7 = tpu.dynamic_rotate %2 by %c1_i32 dim 0 : vector<16x8xf32>, i32 -> vector<16x8xf32>
    %cst = arith.constant 0.000000e+00 : f32
    %8 = vector.shape_cast %6 : vector<16x1xi1> to vector<16x1xi1>
    %9 = vector.broadcast %8 : vector<16x1xi1> to vector<16x8xi1>
    %10 = vector.broadcast %cst : f32 to vector<16x8xf32>
    %11 = arith.select %9, %10, %7 : vector<16x8xi1>, vector<16x8xf32>
    %c15_i32 = arith.constant 15 : i32
    %12 = vector.broadcast %c15_i32 : i32 to vector<16x1xi32>
    %13 = arith.cmpi eq, %4, %12 : vector<16x1xi32>
    %c15_i32_2 = arith.constant 15 : i32
    %14 = tpu.dynamic_rotate %2 by %c15_i32_2 dim 0 : vector<16x8xf32>, i32 -> vector<16x8xf32>
    %cst_3 = arith.constant 0.000000e+00 : f32
    %15 = vector.shape_cast %13 : vector<16x1xi1> to vector<16x1xi1>
    %16 = vector.broadcast %15 : vector<16x1xi1> to vector<16x8xi1>
    %17 = vector.broadcast %cst_3 : f32 to vector<16x8xf32>
    %18 = arith.select %16, %17, %14 : vector<16x8xi1>, vector<16x8xf32>
    %19 = arith.truncf %11 : vector<16x8xf32> to vector<16x8xbf16>
    %20 = arith.truncf %18 : vector<16x8xf32> to vector<16x8xbf16>
    %21 = tpu.concatenate %19, %1, %20 in 1 : vector<16x8xbf16>, vector<16x8xbf16>, vector<16x8xbf16> -> vector<16x24xbf16>
    %c0_4 = arith.constant 0 : index
    %c0_5 = arith.constant 0 : index
    %22 = vector.load %arg2[%c0_4, %c0_5] : memref<24x64xbf16, #tpu.memory_space<vmem>>, vector<24x64xbf16>
    %cst_6 = arith.constant dense<0.000000e+00> : vector<16x64xf32>
    %23 = tpu.matmul %21, %22, %cst_6 {dimension_numbers = #tpu.dot_dimension_numbers<[1], [0], [0], [1], [0, 0, 1, 1], [], []>} : vector<16x24xbf16>, vector<24x64xbf16>, vector<16x64xf32> -> vector<16x64xf32>
    %c0_7 = arith.constant 0 : index
    %c0_8 = arith.constant 0 : index
    %24 = vector.load %arg3[%c0_7, %c0_8] : memref<1x64xf32, #tpu.memory_space<vmem>>, vector<1x64xf32>
    %25 = vector.broadcast %24 : vector<1x64xf32> to vector<16x64xf32>
    %26 = arith.mulf %23, %25 : vector<16x64xf32>
    %c0_9 = arith.constant 0 : index
    %c0_10 = arith.constant 0 : index
    %27 = vector.load %arg4[%c0_9, %c0_10] : memref<1x64xf32, #tpu.memory_space<vmem>>, vector<1x64xf32>
    %28 = vector.broadcast %27 : vector<1x64xf32> to vector<16x64xf32>
    %29 = arith.addf %26, %28 : vector<16x64xf32>
    %cst_11 = arith.constant 0.000000e+00 : f32
    %30 = vector.broadcast %cst_11 : f32 to vector<16x64xf32>
    %31 = arith.maximumf %29, %30 : vector<16x64xf32>
    %c0_12 = arith.constant 0 : index
    %c0_13 = arith.constant 0 : index
    %32 = vector.load %arg11[%c0_12, %c0_13] : memref<16x64xf32, #tpu.memory_space<vmem>>, vector<16x64xf32>
    tpu.vector_store %arg11[%c0_12, %c0_13], %31 {strides = array<i32>} : memref<16x64xf32, #tpu.memory_space<vmem>>, vector<16x64xf32>,
    %c0_14 = arith.constant 0 : index
    %c0_15 = arith.constant 0 : index
    %33 = tpu.strided_load %arg11[%c0_14, %c0_15] {strides = array<i32: 2, 1>} : memref<16x64xf32, #tpu.memory_space<vmem>>, vector<8x64xf32>
    %c1 = arith.constant 1 : index
    %c0_16 = arith.constant 0 : index
    %34 = tpu.strided_load %arg11[%c1, %c0_16] {strides = array<i32: 2, 1>} : memref<16x64xf32, #tpu.memory_space<vmem>>, vector<8x64xf32>
    %35 = arith.maximumf %33, %34 : vector<8x64xf32>
    %36 = tpu.iota {dimensions = array<i32: 1>} : vector<1x8x1xi32>
    %37 = vector.shape_cast %36 : vector<1x8x1xi32> to vector<8x1xi32>
    %c0_i32_17 = arith.constant 0 : i32
    %38 = vector.broadcast %c0_i32_17 : i32 to vector<8x1xi32>
    %39 = arith.cmpi eq, %37, %38 : vector<8x1xi32>
    %c1_i32_18 = arith.constant 1 : i32
    %40 = tpu.dynamic_rotate %35 by %c1_i32_18 dim 0 : vector<8x64xf32>, i32 -> vector<8x64xf32>
    %cst_19 = arith.constant 0.000000e+00 : f32
    %41 = vector.shape_cast %39 : vector<8x1xi1> to vector<8x1xi1>
    %42 = vector.broadcast %41 : vector<8x1xi1> to vector<8x64xi1>
    %43 = vector.broadcast %cst_19 : f32 to vector<8x64xf32>
    %44 = arith.select %42, %43, %40 : vector<8x64xi1>, vector<8x64xf32>
    %c7_i32 = arith.constant 7 : i32
    %45 = vector.broadcast %c7_i32 : i32 to vector<8x1xi32>
    %46 = arith.cmpi eq, %37, %45 : vector<8x1xi32>
    %c7_i32_20 = arith.constant 7 : i32
    %47 = tpu.dynamic_rotate %35 by %c7_i32_20 dim 0 : vector<8x64xf32>, i32 -> vector<8x64xf32>
    %cst_21 = arith.constant 0.000000e+00 : f32
    %48 = vector.shape_cast %46 : vector<8x1xi1> to vector<8x1xi1>
    %49 = vector.broadcast %48 : vector<8x1xi1> to vector<8x64xi1>
    %50 = vector.broadcast %cst_21 : f32 to vector<8x64xf32>
    %51 = arith.select %49, %50, %47 : vector<8x64xi1>, vector<8x64xf32>
    %52 = arith.truncf %44 : vector<8x64xf32> to vector<8x64xbf16>
    %53 = arith.truncf %35 : vector<8x64xf32> to vector<8x64xbf16>
    %54 = arith.truncf %51 : vector<8x64xf32> to vector<8x64xbf16>
    %55 = tpu.concatenate %52, %53, %54 in 1 : vector<8x64xbf16>, vector<8x64xbf16>, vector<8x64xbf16> -> vector<8x192xbf16>
    %c0_22 = arith.constant 0 : index
    %c0_23 = arith.constant 0 : index
    %56 = vector.load %arg5[%c0_22, %c0_23] : memref<192x128xbf16, #tpu.memory_space<vmem>>, vector<192x128xbf16>
    %cst_24 = arith.constant dense<0.000000e+00> : vector<8x128xf32>
    %57 = tpu.matmul %55, %56, %cst_24 {dimension_numbers = #tpu.dot_dimension_numbers<[1], [0], [0], [1], [0, 0, 1, 1], [], []>} : vector<8x192xbf16>, vector<192x128xbf16>, vector<8x128xf32> -> vector<8x128xf32>
    %c0_25 = arith.constant 0 : index
    %c0_26 = arith.constant 0 : index
    %58 = vector.load %arg6[%c0_25, %c0_26] : memref<1x128xf32, #tpu.memory_space<vmem>>, vector<1x128xf32>
    %59 = vector.broadcast %58 : vector<1x128xf32> to vector<8x128xf32>
    %60 = arith.mulf %57, %59 : vector<8x128xf32>
    %c0_27 = arith.constant 0 : index
    %c0_28 = arith.constant 0 : index
    %61 = vector.load %arg7[%c0_27, %c0_28] : memref<1x128xf32, #tpu.memory_space<vmem>>, vector<1x128xf32>
    %62 = vector.broadcast %61 : vector<1x128xf32> to vector<8x128xf32>
    %63 = arith.addf %60, %62 : vector<8x128xf32>
    %cst_29 = arith.constant 0.000000e+00 : f32
    %64 = vector.broadcast %cst_29 : f32 to vector<8x128xf32>
    %65 = arith.maximumf %63, %64 : vector<8x128xf32>
    %c0_30 = arith.constant 0 : index
    %c0_31 = arith.constant 0 : index
    %66 = vector.load %arg12[%c0_30, %c0_31] : memref<8x128xf32, #tpu.memory_space<vmem>>, vector<8x128xf32>
    tpu.vector_store %arg12[%c0_30, %c0_31], %65 {strides = array<i32>} : memref<8x128xf32, #tpu.memory_space<vmem>>, vector<8x128xf32>,
    %c0_32 = arith.constant 0 : index
    %c0_33 = arith.constant 0 : index
    %67 = tpu.strided_load %arg12[%c0_32, %c0_33] {strides = array<i32: 2, 1>} : memref<8x128xf32, #tpu.memory_space<vmem>>, vector<4x128xf32>
    %c1_34 = arith.constant 1 : index
    %c0_35 = arith.constant 0 : index
    %68 = tpu.strided_load %arg12[%c1_34, %c0_35] {strides = array<i32: 2, 1>} : memref<8x128xf32, #tpu.memory_space<vmem>>, vector<4x128xf32>
    %69 = arith.maximumf %67, %68 : vector<4x128xf32>
    %70 = vector.shape_cast %69 : vector<4x128xf32> to vector<1x4x128xf32>
    %cst_36 = arith.constant dense<0.000000e+00> : vector<1x128xf32>
    %71 = vector.multi_reduction <add>, %70, %cst_36 [1] : vector<1x4x128xf32> to vector<1x128xf32>
    %cst_37 = arith.constant 2.500000e-01 : f32
    %72 = vector.broadcast %cst_37 : f32 to vector<1x128xf32>
    %73 = arith.mulf %71, %72 : vector<1x128xf32>
    %c0_38 = arith.constant 0 : index
    %c0_39 = arith.constant 0 : index
    %74 = vector.load %arg8[%c0_38, %c0_39] : memref<128x2xf32, #tpu.memory_space<vmem>>, vector<128x2xf32>
    %cst_40 = arith.constant dense<0.000000e+00> : vector<1x2xf32>
    %75 = tpu.matmul %73, %74, %cst_40 {dimension_numbers = #tpu.dot_dimension_numbers<[1], [0], [0], [1], [0, 0, 1, 1], [], []>} : vector<1x128xf32>, vector<128x2xf32>, vector<1x2xf32> -> vector<1x2xf32>
    %c0_41 = arith.constant 0 : index
    %c0_42 = arith.constant 0 : index
    %76 = vector.load %arg9[%c0_41, %c0_42] : memref<1x2xf32, #tpu.memory_space<vmem>>, vector<1x2xf32>
    %77 = arith.addf %75, %76 : vector<1x2xf32>
    %cst_43 = arith.constant dense<0xFF800000> : vector<1xf32>
    %78 = vector.multi_reduction <maximumf>, %77, %cst_43 [1] : vector<1x2xf32> to vector<1xf32>
    %79 = vector.shape_cast %78 : vector<1xf32> to vector<1x1xf32>
    %80 = vector.broadcast %79 : vector<1x1xf32> to vector<1x2xf32>
    %81 = arith.subf %77, %80 : vector<1x2xf32>
    %82 = math.exp %81 : vector<1x2xf32>
    %cst_44 = arith.constant dense<0.000000e+00> : vector<1xf32>
    %83 = vector.multi_reduction <add>, %82, %cst_44 [1] : vector<1x2xf32> to vector<1xf32>
    %84 = vector.shape_cast %83 : vector<1xf32> to vector<1x1xf32>
    %85 = tpu.reciprocal %84 {approx = true} : vector<1x1xf32> -> vector<1x1xf32>
    %86 = vector.broadcast %85 : vector<1x1xf32> to vector<1x2xf32>
    %87 = arith.mulf %82, %86 : vector<1x2xf32>
    %c0_45 = arith.constant 0 : index
    %c0_46 = arith.constant 0 : index
    %c0_47 = arith.constant 0 : index
    %88 = vector.load %arg10[%c0_45, %c0_46, %c0_47] : memref<1x1x2xf32, #tpu.memory_space<vmem>>, vector<1x1x2xf32>
    %89 = vector.shape_cast %88 : vector<1x1x2xf32> to vector<1x2xf32>
    %90 = vector.shape_cast %87 : vector<1x2xf32> to vector<1x1x2xf32>
    tpu.vector_store %arg10[%c0_45, %c0_46, %c0_47], %90 {strides = array<i32>} : memref<1x1x2xf32, #tpu.memory_space<vmem>>, vector<1x1x2xf32>,
    return
  }
  func.func @transform_0(%arg0: i32) -> (i32, i32, i32) {
    %c0_i32 = arith.constant 0 : i32
    %c0_i32_0 = arith.constant 0 : i32
    %c0_i32_1 = arith.constant 0 : i32
    return %arg0, %c0_i32, %c0_i32_0 : i32, i32, i32
  }
  func.func @transform_1(%arg0: i32) -> (i32, i32) {
    %c0_i32 = arith.constant 0 : i32
    %c0_i32_0 = arith.constant 0 : i32
    %c0_i32_1 = arith.constant 0 : i32
    return %c0_i32, %c0_i32_0 : i32, i32
  }
  func.func @transform_2(%arg0: i32) -> (i32, i32) {
    %c0_i32 = arith.constant 0 : i32
    %c0_i32_0 = arith.constant 0 : i32
    %c0_i32_1 = arith.constant 0 : i32
    return %c0_i32, %c0_i32_0 : i32, i32
  }
  func.func @transform_3(%arg0: i32) -> (i32, i32) {
    %c0_i32 = arith.constant 0 : i32
    %c0_i32_0 = arith.constant 0 : i32
    %c0_i32_1 = arith.constant 0 : i32
    return %c0_i32, %c0_i32_0 : i32, i32
  }
  func.func @transform_4(%arg0: i32) -> (i32, i32) {
    %c0_i32 = arith.constant 0 : i32
    %c0_i32_0 = arith.constant 0 : i32
    %c0_i32_1 = arith.constant 0 : i32
    return %c0_i32, %c0_i32_0 : i32, i32
  }
  func.func @transform_5(%arg0: i32) -> (i32, i32) {
    %c0_i32 = arith.constant 0 : i32
    %c0_i32_0 = arith.constant 0 : i32
    %c0_i32_1 = arith.constant 0 : i32
    return %c0_i32, %c0_i32_0 : i32, i32
  }
  func.func @transform_6(%arg0: i32) -> (i32, i32) {
    %c0_i32 = arith.constant 0 : i32
    %c0_i32_0 = arith.constant 0 : i32
    %c0_i32_1 = arith.constant 0 : i32
    return %c0_i32, %c0_i32_0 : i32, i32
  }
  func.func @transform_7(%arg0: i32) -> (i32, i32) {
    %c0_i32 = arith.constant 0 : i32
    %c0_i32_0 = arith.constant 0 : i32
    %c0_i32_1 = arith.constant 0 : i32
    return %c0_i32, %c0_i32_0 : i32, i32
  }
  func.func @transform_8(%arg0: i32) -> (i32, i32) {
    %c0_i32 = arith.constant 0 : i32
    %c0_i32_0 = arith.constant 0 : i32
    %c0_i32_1 = arith.constant 0 : i32
    return %c0_i32, %c0_i32_0 : i32, i32
  }
  func.func @transform_9(%arg0: i32) -> (i32, i32, i32) {
    %c0_i32 = arith.constant 0 : i32
    %c0_i32_0 = arith.constant 0 : i32
    %c0_i32_1 = arith.constant 0 : i32
    return %arg0, %c0_i32, %c0_i32_0 : i32, i32, i32
  }
}

</mosaic_0001>

<bundles_post_ra>
// kernel: cnn_forward.1
= control target key start
LH: loop header
LB: loop body
LE: loop exit
PB: predicated region body
PF: predicated region fallthrough
CT: control target
= control target key end

     0   :  { %s2161_s0 = inlined_call_operand.hbm [shape: bf16[2,16,8], index: 0, kind: input, shape index: {}]   ;;  %s2162_s1 = inlined_call_operand.hbm [shape: bf16[24,64], index: 1, kind: input, shape index: {}]   ;;  %s2163_s2 = inlined_call_operand.hbm [shape: f32[1,64], index: 2, kind: input, shape index: {}]   ;;  %s2164_s3 = inlined_call_operand.hbm [shape: f32[1,64], index: 3, kind: input, shape index: {}]   ;;  %s2165_s4 = inlined_call_operand.hbm [shape: bf16[192,128], index: 4, kind: input, shape index: {}]   ;;  %s2166_s5 = inlined_call_operand.hbm [shape: f32[1,128], index: 5, kind: input, shape index: {}]   ;;  %s2167_s6 = inlined_call_operand.hbm [shape: f32[1,128], index: 6, kind: input, shape index: {}]   ;;  %s2168_s7 = inlined_call_operand.hbm [shape: f32[128,2], index: 7, kind: input, shape index: {}]   ;;  %s2169_s8 = inlined_call_operand.hbm [shape: f32[1,2], index: 8, kind: input, shape index: {}]   ;;  %s2170_s9 = inlined_call_operand.hbm [shape: f32[2,1,2], index: 9, kind: output, shape index: {}]  }
   0x1   :  { %2179 = sst [smem:[#allocation26_spill]] %s2162_s1 }
   0x2   :  { %2180 = sst [smem:[#allocation27_spill]] %s2163_s2 }
   0x3   :  { %2181 = sst [smem:[#allocation28_spill]] %s2170_s9 }
   0x4   :  { %14 = vsyncpa [#allocation5], 0 }
   0x5   :  { %16 = vsyncpa [#allocation5 + $0x1], 0 }
   0x6   :  { %17 = vsyncpa [#allocation8], 0 }
   0x7   :  { %18 = vsyncpa [#allocation11], 0 }
   0x8   :  { %19 = vsyncpa [#allocation14], 0 }
   0x9   :  { %20 = vsyncpa [#allocation17], 0 }
   0xa   :  { %21 = vsyncpa [#allocation6], 0 }
   0xb   :  { %23 = vsyncpa [#allocation6 + $0x1], 0  ;;  %s1740_s30 = smov 0   ;;  %s1742_s10 = smov 0  }
   0xc   :  { %s1744_s11 = smov 0   ;;  %s1746_s12 = smov 0  }
   0xd LB: > { %s1669_s13 = smov [#allocation7]   ;;  %s1761_s15 = sadd.s32 4294967295, %s1667_s12   ;;  %s1667_s12 = sphi %s1746_s12, %s2211_s12   ;;  %s1663_s11 = sphi %s1744_s11, %s2210_s11   ;;  %s1659_s10 = sphi %s1742_s10, %s2209_s10   ;;  %s1655_s30 = sphi %s1740_s30, %s2208_s30  }
   0xe   : > { %s266_s14 = sshll.u32 %s1669_s13, 4  ;;  %p1038_p0 = scmp.ge.s32.totalorder %s1667_s12, 1  ;;  %s1766_s14 = int_to_ptr.vmem [resolvable:$true] %s266_s14 }
   0xf   : > { %p2172_p1 = scmp.eq.s32.totalorder %s1761_s15, 0  ;;  %p254_p2 = scmp.lt.s32.totalorder %s1667_s12, 3 }
  0x10   : > { %s1670_s17 = smov [#allocation10]   ;;  %s1671_s20 = smov [#allocation13]  }
  0x11   : > { %p1768_p3 = pnand %p1038_p0, %p254_p2  ;;  %s291_s18 = sshll.u32 %s1670_s17, 4  ;;  %s1781_s18 = int_to_ptr.vmem [resolvable:$true] %s291_s18 }
  0x12   : > { %s315_s21 = sshll.u32 %s1671_s20, 4  ;;  %s2184_s1 = sld [smem:[#allocation26_spill]]  ;;  %s1783_s21 = int_to_ptr.vmem [resolvable:$true] %s315_s21 }
  0x13   : > { %s2182_s16 = scalar_select %p1768_p3, 1, 0 }
  0x14   : > { %p1209_p5 = pneg %p1768_p3 }
  0x16   : > { %p1777_p6 = pnand %p1209_p5, %p2172_p1 }
  0x18   : > { %s1331_s24 = scalar_lea.hbm %s2184_s1, 192  ;;  %p1793_p8 = pneg %p1777_p6 }
  0x19   : > { %p1332_p7 = scmp.ne.s32.totalorder %s2184_s1, %s1331_s24  ;;  %p1338_p11 = scmp.lt.u32.totalorder %s1331_s24, %s2184_s1 }
  0x1b   : > { %p1334_p9 = pnand %p1793_p8, %p1332_p7 }
  0x1d   : > { %p1335_p10 = pneg %p1334_p9 }
  0x1f   : > { %p1340_p12 = pnand %p1338_p11, %p1335_p10 }
  0x21   : > { %1343 = shalt.err (!%p1340_p12)
}
  0x22   : > { %s1344_s13 = scalar_lea.vmem %s1766_s14, 192  ;;  %p1352_p5 = scmp.lt.s32.totalorder %s1766_s14, %s1766_s14 }
  0x23   : > { %p1345_p13 = scmp.ne.s32.totalorder %s1766_s14, %s1344_s13  ;;  %p1353_p4 = scmp.lt.s32.totalorder %s1344_s13, %s1344_s13 }
  0x25   : > { %p1347_p0 = pnand %p1345_p13, %p1793_p8  ;;  %p1354_p7 = por %p1353_p4, %p1352_p5 }
  0x27   : > { %p1348_p2 = pneg %p1347_p0 }
  0x29   : > { %p1355_p9 = pnand %p1354_p7, %p1348_p2 }
  0x2b   : > { %1358 = shalt.err (!%p1355_p9)
}
  0x2c   : > { %s2174_s17 = smov 64   ;;  %s2176_s20 = smov 4  }
  0x2d   : > { %1212 = dma.hbm_to_vmem [thread:$0]  (!%p1777_p6), %s2184_s1, 192, %s1766_s14, [#allocation8], %s2174_s17, %s2174_s17, %s2176_s20  }
  0x2e   : > { %s1359_s26 = scalar_lea.hbm %s2164_s3, 16 }
  0x2f   : > { %p1360_p4 = scmp.ne.s32.totalorder %s2164_s3, %s1359_s26  ;;  %p1366_p12 = scmp.lt.u32.totalorder %s1359_s26, %s2164_s3 }
  0x31   : > { %p1362_p10 = pnand %p1360_p4, %p1793_p8 }
  0x33   : > { %p1363_p11 = pneg %p1362_p10 }
  0x35   : > { %p1368_p13 = pnand %p1366_p12, %p1363_p11 }
  0x37   : > { %1371 = shalt.err (!%p1368_p13)
}
  0x38   : > { %s1372_s14 = scalar_lea.vmem %s1781_s18, 16  ;;  %s1379_s22 = scalar_lea.vmem %s1781_s18, 32 }
  0x39   : > { %p1373_p0 = scmp.ne.s32.totalorder %s1781_s18, %s1372_s14  ;;  %p1380_p7 = scmp.lt.s32.totalorder %s1781_s18, %s1781_s18 }
  0x3a   : > { %p1381_p9 = scmp.lt.s32.totalorder %s1379_s22, %s1372_s14 }
  0x3b   : > { %p1375_p2 = pnand %p1373_p0, %p1793_p8 }
  0x3c   : > { %p1382_p4 = por %p1381_p9, %p1380_p7 }
  0x3d   : > { %p1376_p5 = pneg %p1375_p2 }
  0x3f   : > { %p1383_p10 = pnand %p1382_p4, %p1376_p5 }
  0x41   : > { %1386 = shalt.err (!%p1383_p10)
}
  0x42   : > { %1218 = dma.hbm_to_vmem [thread:$0]  (!%p1777_p6), %s2164_s3, 16, %s1781_s18, [#allocation11]  }
  0x43   : > { %s1387_s26 = scalar_lea.hbm %s2166_s5, 16 }
  0x44   : > { %p1388_p11 = scmp.ne.s32.totalorder %s2166_s5, %s1387_s26  ;;  %p1394_p0 = scmp.lt.u32.totalorder %s1387_s26, %s2166_s5 }
  0x46   : > { %p1390_p12 = pnand %p1388_p11, %p1793_p8 }
  0x48   : > { %p1391_p13 = pneg %p1390_p12 }
  0x4a   : > { %p1396_p2 = pnand %p1394_p0, %p1391_p13 }
  0x4c   : > { %1399 = shalt.err (!%p1396_p2)
}
  0x4d   : > { %s1400_s18 = scalar_lea.vmem %s1783_s21, 16  ;;  %s1407_s22 = scalar_lea.vmem %s1783_s21, 32 }
  0x4e   : > { %p1401_p5 = scmp.ne.s32.totalorder %s1783_s21, %s1400_s18  ;;  %p1408_p4 = scmp.lt.s32.totalorder %s1783_s21, %s1783_s21 }
  0x4f   : > { %p1409_p10 = scmp.lt.s32.totalorder %s1407_s22, %s1400_s18 }
  0x50   : > { %p1403_p7 = pnand %p1401_p5, %p1793_p8 }
  0x51   : > { %p1410_p11 = por %p1409_p10, %p1408_p4 }
  0x52   : > { %p1404_p9 = pneg %p1403_p7 }
  0x54   : > { %p1411_p12 = pnand %p1410_p11, %p1404_p9 }
  0x56   : > { %1414 = shalt.err (!%p1411_p12)
}
  0x57   : > { %1224 = dma.hbm_to_vmem [thread:$0]  (!%p1777_p6), %s2166_s5, 16, %s1783_s21, [#allocation14]  }
  0x58   : > { %s1674_s24 = smov [#allocation16]   ;;  %s1415_s29 = scalar_lea.hbm %s2168_s7, 2048 }
  0x59   : > { %s336_s25 = sshll.u32 %s1674_s24, 4  ;;  %p1416_p13 = scmp.ne.s32.totalorder %s2168_s7, %s1415_s29  ;;  %s337_s25 = int_to_ptr.vmem [resolvable:$true] %s336_s25 }
  0x5a   : > { %p1422_p5 = scmp.lt.u32.totalorder %s1415_s29, %s2168_s7 }
  0x5b   : > { %p1418_p0 = pnand %p1416_p13, %p1793_p8 }
  0x5d   : > { %p1419_p2 = pneg %p1418_p0 }
  0x5f   : > { %p1424_p7 = pnand %p1422_p5, %p1419_p2 }
  0x61   : > { %1427 = shalt.err (!%p1424_p7)
}
  0x62   : > { %s1428_s21 = scalar_lea.vmem %s337_s25, 2048  ;;  %p1436_p11 = scmp.lt.s32.totalorder %s337_s25, %s337_s25 }
  0x63   : > { %p1429_p9 = scmp.ne.s32.totalorder %s337_s25, %s1428_s21  ;;  %p1437_p12 = scmp.lt.s32.totalorder %s1428_s21, %s1428_s21 }
  0x65   : > { %p1431_p4 = pnand %p1429_p9, %p1793_p8  ;;  %p1438_p1 = por %p1437_p12, %p1436_p11 }
  0x67   : > { %p1432_p10 = pneg %p1431_p4 }
  0x69   : > { %p1439_p3 = pnand %p1438_p1, %p1432_p10 }
  0x6b   : > { %1442 = shalt.err (!%p1439_p3)
}
  0x6c   : > { %s1675_s9 = smov 128   ;;  %s1676_s23 = smov 8  }
  0x6d   : > { %1230 = dma.hbm_to_vmem [thread:$0]  (!%p1777_p6), %s2168_s7, 2048, %s337_s25, [#allocation17], %s1675_s9, %s1675_s9, %s1676_s23  }
  0x6e   : > { %s1677_s28 = smov [#allocation9]   ;;  %s1678_s13 = smov [#allocation12]  }
  0x6f   : > { %s280_s29 = sshll.u32 %s1677_s28, 4  ;;  %s301_s14 = sshll.u32 %s1678_s13, 4  ;;  %s281_s29 = int_to_ptr.vmem [resolvable:$true] %s280_s29  ;;  %s1883_s14 = int_to_ptr.vmem [resolvable:$true] %s301_s14 }
  0x70   : > { %s2186_s2 = sld [smem:[#allocation27_spill]] }
  0x76   : > { %s1443_s21 = scalar_lea.hbm %s2186_s2, 16 }
  0x77   : > { %p1444_p1 = scmp.ne.s32.totalorder %s2186_s2, %s1443_s21  ;;  %p1450_p0 = scmp.lt.u32.totalorder %s1443_s21, %s2186_s2 }
  0x79   : > { %p1446_p3 = pnand %p1444_p1, %p1793_p8 }
  0x7b   : > { %p1447_p13 = pneg %p1446_p3 }
  0x7d   : > { %p1452_p2 = pnand %p1450_p0, %p1447_p13 }
  0x7f   : > { %1455 = shalt.err (!%p1452_p2)
}
  0x80   : > { %s1456_s9 = scalar_lea.vmem %s281_s29, 16  ;;  %s1463_s23 = scalar_lea.vmem %s281_s29, 32 }
  0x81   : > { %p1457_p5 = scmp.ne.s32.totalorder %s281_s29, %s1456_s9  ;;  %p1464_p4 = scmp.lt.s32.totalorder %s281_s29, %s281_s29 }
  0x82   : > { %p1465_p10 = scmp.lt.s32.totalorder %s1463_s23, %s1456_s9 }
  0x83   : > { %p1459_p7 = pnand %p1457_p5, %p1793_p8 }
  0x84   : > { %p1466_p11 = por %p1465_p10, %p1464_p4 }
  0x85   : > { %p1460_p9 = pneg %p1459_p7 }
  0x87   : > { %p1467_p12 = pnand %p1466_p11, %p1460_p9 }
  0x89   : > { %1470 = shalt.err (!%p1467_p12)
}
  0x8a   : > { %1215 = dma.hbm_to_vmem [thread:$0]  (!%p1777_p6), %s2186_s2, 16, %s281_s29, [#allocation8]  }
  0x8b   : > { %s1471_s13 = scalar_lea.hbm %s2165_s4, 1536 }
  0x8c   : > { %p1472_p1 = scmp.ne.s32.totalorder %s2165_s4, %s1471_s13  ;;  %p1478_p0 = scmp.lt.u32.totalorder %s1471_s13, %s2165_s4 }
  0x8e   : > { %p1474_p3 = pnand %p1472_p1, %p1793_p8 }
  0x90   : > { %p1475_p13 = pneg %p1474_p3 }
  0x92   : > { %p1480_p2 = pnand %p1478_p0, %p1475_p13 }
  0x94   : > { %1483 = shalt.err (!%p1480_p2)
}
  0x95   : > { %s1484_s29 = scalar_lea.vmem %s1883_s14, 1536  ;;  %p1492_p4 = scmp.lt.s32.totalorder %s1883_s14, %s1883_s14 }
  0x96   : > { %p1485_p5 = scmp.ne.s32.totalorder %s1883_s14, %s1484_s29  ;;  %p1493_p10 = scmp.lt.s32.totalorder %s1484_s29, %s1484_s29 }
  0x98   : > { %p1487_p7 = pnand %p1485_p5, %p1793_p8  ;;  %p1494_p11 = por %p1493_p10, %p1492_p4 }
  0x9a   : > { %p1488_p9 = pneg %p1487_p7 }
  0x9c   : > { %p1495_p12 = pnand %p1494_p11, %p1488_p9 }
  0x9e   : > { %1498 = shalt.err (!%p1495_p12)
}
  0x9f   : > { %s2187_s25 = smov 4   ;;  %s2188_s9 = smov 64  }
  0xa0   : > { %1221 = dma.hbm_to_vmem [thread:$0]  (!%p1777_p6), %s2165_s4, 1536, %s1883_s14, [#allocation11], %s2188_s9, %s2188_s9, %s2187_s25  }
  0xa1   : > { %s1679_s20 = smov [#allocation15]   ;;  %s1680_s28 = smov [#allocation18]  }
  0xa2   : > { %s326_s26 = sshll.u32 %s1679_s20, 4  ;;  %s350_s13 = sshll.u32 %s1680_s28, 4  ;;  %s327_s26 = int_to_ptr.vmem [resolvable:$true] %s326_s26  ;;  %s1929_s13 = int_to_ptr.vmem [resolvable:$true] %s350_s13 }
  0xa3   : > { %s1499_s21 = scalar_lea.hbm %s2167_s6, 16 }
  0xa4   : > { %p1500_p1 = scmp.ne.s32.totalorder %s2167_s6, %s1499_s21  ;;  %p1506_p0 = scmp.lt.u32.totalorder %s1499_s21, %s2167_s6 }
  0xa6   : > { %p1502_p3 = pnand %p1500_p1, %p1793_p8 }
  0xa8   : > { %p1503_p13 = pneg %p1502_p3 }
  0xaa   : > { %p1508_p2 = pnand %p1506_p0, %p1503_p13 }
  0xac   : > { %1511 = shalt.err (!%p1508_p2)
}
  0xad   : > { %s1512_s17 = scalar_lea.vmem %s327_s26, 16  ;;  %s1519_s20 = scalar_lea.vmem %s327_s26, 32 }
  0xae   : > { %p1513_p5 = scmp.ne.s32.totalorder %s327_s26, %s1512_s17  ;;  %p1520_p4 = scmp.lt.s32.totalorder %s327_s26, %s327_s26 }
  0xaf   : > { %p1521_p10 = scmp.lt.s32.totalorder %s1519_s20, %s1512_s17 }
  0xb0   : > { %p1515_p7 = pnand %p1513_p5, %p1793_p8 }
  0xb1   : > { %p1522_p11 = por %p1521_p10, %p1520_p4 }
  0xb2   : > { %p1516_p9 = pneg %p1515_p7 }
  0xb4   : > { %p1523_p12 = pnand %p1522_p11, %p1516_p9 }
  0xb6   : > { %1526 = shalt.err (!%p1523_p12)
}
  0xb7   : > { %1227 = dma.hbm_to_vmem [thread:$0]  (!%p1777_p6), %s2167_s6, 16, %s327_s26, [#allocation14]  }
  0xb8   : > { %s1527_s24 = scalar_lea.hbm %s2169_s8, 16 }
  0xb9   : > { %p1528_p1 = scmp.ne.s32.totalorder %s2169_s8, %s1527_s24  ;;  %p1534_p0 = scmp.lt.u32.totalorder %s1527_s24, %s2169_s8 }
  0xbb   : > { %p1530_p3 = pnand %p1528_p1, %p1793_p8 }
  0xbd   : > { %p1531_p13 = pneg %p1530_p3 }
  0xbf   : > { %p1536_p2 = pnand %p1534_p0, %p1531_p13 }
  0xc1   : > { %1539 = shalt.err (!%p1536_p2)
}
  0xc2   : > { %s1540_s26 = scalar_lea.vmem %s1929_s13, 16  ;;  %s1547_s20 = scalar_lea.vmem %s1929_s13, 32 }
  0xc3   : > { %p1541_p5 = scmp.ne.s32.totalorder %s1929_s13, %s1540_s26  ;;  %p1548_p4 = scmp.lt.s32.totalorder %s1929_s13, %s1929_s13 }
  0xc4   : > { %p1549_p10 = scmp.lt.s32.totalorder %s1547_s20, %s1540_s26 }
  0xc5   : > { %p1543_p7 = pnand %p1541_p5, %p1793_p8 }
  0xc6   : > { %p1550_p11 = por %p1549_p10, %p1548_p4 }
  0xc7   : > { %p1544_p9 = pneg %p1543_p7 }
  0xc9   : > { %p1551_p12 = pnand %p1550_p11, %p1544_p9 }
  0xcb   : > { %1554 = shalt.err (!%p1551_p12)
}
  0xcc   : > { %1233 = dma.hbm_to_vmem [thread:$0]  (!%p1777_p6), %s2169_s8, 16, %s1929_s13, [#allocation17]  }
  0xcd   : > { %s1037_s19 = sadd.s32 4294967294, %s1667_s12   ;;  %s1975_s27 = sadd.s32 1, %s1667_s12  }
  0xce   : > { %s33_s22 = ssub.s32 %s1667_s12, %s1975_s27  ;;  %s36_s21 = sadd.s32 1, %s1663_s11 }
  0xcf   : > { %p34_p8 = scmp.eq.s32.totalorder %s33_s22, 0  ;;  %p43_p1 = scmp.ne.s32.totalorder %s1663_s11, %s1659_s10 }
  0xd0   : > { %p44_p3 = scmp.eq.s32.totalorder %s1667_s12, 0  ;;  %p49_p13 = scmp.ne.s32.totalorder %s1659_s10, %s1655_s30 }
  0xd1   : > { %s1986_s24 = scalar_select %p34_p8, %s1663_s11, %s36_s21  }
  0xd2   : > { %p1988_p0 = por %p44_p3, %p43_p1  ;;  %p2190_p2 = scmp.eq.s32.totalorder %s1761_s15, 0 }
  0xd3   : > { %p241_p5 = scmp.eq.s32.totalorder %s1761_s15, 1  ;;  %p247_p7 = scmp.eq.s32.totalorder %s1037_s19, 1 }
  0xd4   : > { %p1994_p6 = por %p2190_p2, %p49_p13  ;;  %p1250_p9 = scmp.lt.s32.totalorder %s1667_s12, 2 }
  0xd5   : > { %s361_s23 = sand.u32 1, %s1663_s11   ;;  %p2001_p4 = por %p241_p5, %p43_p1 }
  0xd6   : > { %p2005_p10 = por %p247_p7, %p49_p13  ;;  %s1048_s26 = sshll.u32 %s361_s23, 3 }
  0xd7   : > { %s2192_s14 = scalar_select %p2001_p4, 1, 0 }
  0xd8   : > { %s2193_s17 = scalar_select %p2005_p10, 1, 0 }
  0xd9   : > { %s1085_s20 = sshll.u32 %s1667_s12, 7  ;;  %s365_s19 = scalar_lea.vmem [#allocation4], %s1048_s26 }
  0xda   : > { %s2013_s22 = scalar_lea.hbm %s2161_s0, %s1085_s20  ;;  %s372_s21 = sshll.u32 %s365_s19, 4  ;;  %s2015_s21 = int_to_ptr.vmem [resolvable:$true] %s372_s21 }
  0xdb   : > { %p2019_p11 = pnand %p1250_p9, %p1988_p0  ;;  %s2023_s2 = scalar_lea.sflag [#allocation5], %s361_s23 }
  0xdc   : > { %s1555_s28 = scalar_lea.hbm %s2013_s22, 128  ;;  %s1560_s29 = scalar_lea.hbm %s2161_s0, 256 }
  0xdd   : > { %p1556_p12 = scmp.ne.s32.totalorder %s2013_s22, %s1555_s28  ;;  %p1557_p8 = pneg %p2019_p11 }
  0xde   : > { %p1561_p13 = scmp.lt.u32.totalorder %s2013_s22, %s2161_s0  ;;  %p1562_p0 = scmp.lt.u32.totalorder %s1560_s29, %s1555_s28 }
  0xdf   : > { %p1558_p1 = pnand %p1557_p8, %p1556_p12  ;;  %p1564_p5 = scmp.lt.u32.totalorder %s1555_s28, %s2013_s22 }
  0xe0   : > { %p1563_p2 = por %p1562_p0, %p1561_p13 }
  0xe1   : > { %p1559_p3 = pneg %p1558_p1 }
  0xe2   : > { %p1565_p7 = por %p1564_p5, %p1563_p2 }
  0xe4   : > { %p1566_p9 = pnand %p1565_p7, %p1559_p3 }
  0xe6   : > { %1569 = shalt.err (!%p1566_p9)
}
  0xe7   : > { %s1570_s23 = scalar_lea.vmem %s2015_s21, 128  ;;  %s1681_s26 = smov [#allocation4]  }
  0xe8   : > { %p1571_p12 = scmp.ne.s32.totalorder %s2015_s21, %s1570_s23  ;;  %s1575_s20 = sshll.u32 %s1681_s26, 4  ;;  %s1576_s20 = int_to_ptr.vmem [resolvable:$false] %s1575_s20 }
  0xe9   : > { %s1577_s18 = scalar_lea.vmem %s1576_s20, 256  ;;  %p1578_p4 = scmp.lt.s32.totalorder %s2015_s21, %s1576_s20 }
  0xea   : > { %p1573_p1 = pnand %p1571_p12, %p1557_p8  ;;  %p1579_p13 = scmp.lt.s32.totalorder %s1577_s18, %s1570_s23 }
  0xec   : > { %p1574_p10 = pneg %p1573_p1  ;;  %p1580_p0 = por %p1579_p13, %p1578_p4 }
  0xee   : > { %p1581_p2 = pnand %p1580_p0, %p1574_p10 }
  0xf0   : > { %1584 = shalt.err (!%p1581_p2)
}
  0xf1   : > { %1237 = dma.hbm_to_vmem [thread:$0]  (!%p2019_p11), %s2013_s22, 128, %s2015_s21, %s2023_s2, %s2188_s9, %s2188_s9, %s2187_s25  }
  0xf2   : > { %p2195_p8 = scmp.ne.s32.totalorder %s2182_s16, 0 }
  0xf3   : > { %s2057_s28 = sand.u32 (!%p2195_p8), 1, %s1659_s10  }
  0xf4   : > { %384 = sbr.rel (%p2195_p8) target bundleno = 1524 (0x5f4), region = 56  ;;  %s1052_s29 = sshll.u32 (!%p2195_p8), %s2057_s28, 3 }
  0xf5   : > { %s387_s19 = scalar_lea.sflag (!%p2195_p8), [#allocation5], %s2057_s28  ;;  %s390_s23 = scalar_lea.vmem (!%p2195_p8), [#allocation4], %s1052_s29 }
  0xfb   : > { %1630 = dma.done.wait (%p1994_p6), %s387_s19, 128  }
  0xfc   : > { %1632 = vsyncadd (%p1994_p6), %s387_s19, 4294967168  ;;  %p2196_p4 = scmp.eq.s32.totalorder %s1761_s15, 0 }
  0xfe   : > { %1634 = dma.done.wait (%p2196_p4), [#allocation8], 208   ;;  %p2197_p10 = pmov %p2196_p4 }
  0xff   : > { %p2198_p11 = pmov %p2196_p4 }
 0x100   : > { %1636 = vsyncadd (%p2197_p10), [#allocation8], 4294967088 }
 0x101   : > { %1638 = dma.done.wait (%p2198_p11), [#allocation11], 1552   ;;  %p2199_p3 = pmov %p2196_p4 }
 0x103   : > { %1640 = vsyncadd (%p2199_p3), [#allocation11], 4294965744  ;;  %p2200_p5 = pmov %p2199_p3 }
 0x104   : > { %p2201_p7 = pmov %p2199_p3 }
 0x105   : > { %1642 = dma.done.wait (%p2200_p5), [#allocation14], 32  }
 0x106   : > { %1644 = vsyncadd (%p2201_p7), [#allocation14], 4294967264  ;;  %p2202_p6 = pmov %p2199_p3 }
 0x107   : > { %p2203_p9 = pmov %p2199_p3 }
 0x108   : > { %1646 = dma.done.wait (%p2202_p6), [#allocation17], 2064  }
 0x109   : > { %1648 = vsyncadd (%p2203_p9), [#allocation17], 4294965232  ;;  %v461_v0 = vlaneseq  ;;  %v1682_v1 = vmov 0.0   ;;  %vm1683_vm0 = vmmov 0   ;;  %vm524_vm3 = vcmask 1043456   ;;  %v457_v4 = vld [vmem:[%s390_s23] sm:$0xff]  }
 0x10a   : > { %1106 = vmatprep.subr.bf16.mxu0 %v1682_v1  ;;  %1110 = vmatprep.mubr.msk.bf16.mxu0 %vm1683_vm0, %v1682_v1  ;;  %v460_v5 = vunpack.c.h.bf16 %v457_v4  ;;  %v459_v6 = vunpack.c.l.bf16 %v457_v4  ;;  %v1312_v7 = vld [vmem:[#allocation7] sm:$0xff]   ;;  %v1313_v8 = vld [vmem:[#allocation7 + $0x8] ss:$0 sps:$4 sm:$0xff]   ;;  %s1684_s1 = smov 8   ;;  %s1685_s2 = smov 16   ;;  %vm502_vm6 = vcmask 64512  }
 0x10b   : > { %v2081_v2 = vshrl.u32 %v461_v0, 7  ;;  %497 = vrot.lane.b32.xlu0 %v457_v4, %s1684_s1  ;;  %1107 = vmatpush3.bf16.msra.mxu0 %v1312_v7  ;;  %v526_v13 = vsel %vm524_vm3, %v1313_v8, 0  ;;  %vm506_vm7 = vcmask 130048   ;;  %vm521_vm8 = vcmask 195584   ;;  %v1314_v26 = vld [vmem:[#allocation12] sm:$0xff]   ;;  %v1315_v28 = vld [vmem:[#allocation12 + $0x8] sm:$0xff]  }
 0x10c   : > { %v467_v9 = vrot.slane %v460_v5, 7  ;;  %v480_v10 = vrot.slane %v460_v5, 1  ;;  %v466_v11 = vrot.slane %v459_v6, 7  ;;  %v479_v12 = vrot.slane %v459_v6, 1  ;;  %1108 = vmatprep.subr.bf16.mxu0 %v1682_v1  ;;  %v1316_v29 = vld [vmem:[#allocation12 + $0x10] sm:$0xff]   ;;  %v1317_v30 = vld [vmem:[#allocation12 + $0x18] sm:$0xff]  }
 0x10d   : > { %v463_v3 = vadd.s32 8, %v2081_v2  ;;  %vm481_vm1 = vcmp.lt.s32.totalorder %v2081_v2, 7  ;;  %vm464_vm2 = vcmp.eq.s32.totalorder %v2081_v2, 0  ;;  %vm468_vm4 = vcmp.lt.s32.totalorder %v2081_v2, 1  ;;  %v1318_v31 = vld [vmem:[#allocation12 + $0x20] sm:$0xff]   ;;  %v1319_v32 = vld [vmem:[#allocation12 + $0x28] sm:$0xff]  }
 0x10e   : > { %v482_v14 = vsel %vm481_vm1, %v479_v12, %v480_v10  ;;  %v483_v15 = vsel %vm481_vm1, %v480_v10, %v479_v12  ;;  %v469_v16 = vsel %vm468_vm4, %v466_v11, %v467_v9  ;;  %v470_v17 = vsel %vm468_vm4, %v467_v9, %v466_v11  ;;  %v1320_v33 = vld [vmem:[#allocation12 + $0x30] sm:$0xff]   ;;  %v1321_v34 = vld [vmem:[#allocation12 + $0x38] sm:$0xff]   ;;  %v1322_v35 = vld [vmem:[#allocation12 + $0x40] sm:$0xff]   ;;  %s1687_s16 = smov 64   ;;  %s1082_s25 = sshll.u32 %s1761_s15, 4 }
 0x10f   : > { %vm478_vm5 = vcmp.eq.s32.totalorder %v463_v3, 15  ;;  %v475_v19 = vsel %vm464_vm2, 0.0, %v470_v17  ;;  %1109 = vmatpush3.bf16.msra.mxu0 %v526_v13  ;;  %v1686_v27 = vmov 0   ;;  %v1323_v36 = vld [vmem:[#allocation12 + $0x48] sm:$0xff]   ;;  %v1324_v37 = vld [vmem:[#allocation12 + $0x50] sm:$0xff]   ;;  %v1325_v38 = vld [vmem:[#allocation12 + $0x58] sm:$0xff]  }
 0x110   : > { %v489_v18 = vsel %vm478_vm5, 0.0, %v483_v15  ;;  %v490_v21 = vpack.c.bf16 %v469_v16, %v475_v19  ;;  %712 = vmatprep.subr.bf16.mxu1 %v1686_v27  ;;  %v1065_v39 = vld [vmem:[#allocation9] ss:$0 sm:$0xff]  ;;  %v1066_v41 = vld [vmem:[#allocation10] ss:$0 sm:$0xff]  ;;  %vm589_vm9 = vcmask 523264  }
 0x111   : > { %v491_v20 = vpack.c.bf16 %v489_v18, %v482_v14  ;;  %713 = vmatpush1.bf16.msra.mxu1 %v1314_v26  ;;  %vm598_vm10 = vcmp.eq.s32.totalorder %v2081_v2, 7  ;;  %v782_v63 = vld [vmem:[#allocation16] sm:$0xff]  ;;  %v783_v0 = vld [vmem:[#allocation16 + $0x8] sm:$0xff]  ;;  %v1688_v3 = vmov 0.0|0.0   ;;  %v784_v4 = vld [vmem:[#allocation16 + $0x10] sm:$0xff]  ;;  %vm869_vm11 = vcmask 8192  }
 0x112   : > { %714 = vmatprep.subr.bf16.mxu1 %v1686_v27  ;;  %1149 = vmatprep.subr.bf16.mxu0 %v1688_v3  ;;  %v785_v5 = vld [vmem:[#allocation16 + $0x18] sm:$0xff]  ;;  %v786_v7 = vld [vmem:[#allocation16 + $0x20] sm:$0xff]  ;;  %v787_v2 = vld [vmem:[#allocation16 + $0x28] sm:$0xff]  ;;  %s455_s9 = scalar_lea.vmem [#allocation19], %s2057_s28  ;;  %s2204_s26 = sld [smem:[#allocation28_spill]] }
 0x113   : > { %500 = vrot.lane.b32.xlu0 %v491_v20, %s1685_s2  ;;  %v1153_v6 = vpack.c.bf16 %v785_v5, %v784_v4  ;;  %v1156_v8 = vpack.c.bf16 %v787_v2, %v786_v7  ;;  %v788_v9 = vld [vmem:[#allocation16 + $0x30] sm:$0xff]  ;;  %v789_v10 = vld [vmem:[#allocation16 + $0x38] sm:$0xff]  ;;  %v790_v12 = vld [vmem:[#allocation16 + $0x40] sm:$0xff]  ;;  %s895_s13 = sshll.u32 %s455_s9, 4  ;;  %s883_s18 = scalar_lea.sflag [#allocation6], %s2057_s28  ;;  %s2118_s13 = int_to_ptr.vmem [resolvable:$true] %s895_s13 }
 0x114   : > { %v1159_v11 = vpack.c.bf16 %v789_v10, %v788_v9  ;;  %v791_v13 = vld [vmem:[#allocation16 + $0x48] sm:$0xff]  ;;  %v792_v15 = vld [vmem:[#allocation16 + $0x50] sm:$0xff]  ;;  %v793_v16 = vld [vmem:[#allocation16 + $0x58] sm:$0xff]  ;;  %s1585_s29 = scalar_lea.vmem %s2118_s13, 16  ;;  %p2205_p1 = scmp.ne.s32.totalorder %s2192_s14, 0 }
 0x115   : > { %715 = vmatpush1.bf16.msra.mxu1 %v1315_v28  ;;  %v1162_v14 = vpack.c.bf16 %v791_v13, %v790_v12  ;;  %v1165_v17 = vpack.c.bf16 %v793_v16, %v792_v15  ;;  %v794_v18 = vld [vmem:[#allocation16 + $0x60] sm:$0xff]  ;;  %v795_v19 = vld [vmem:[#allocation16 + $0x68] sm:$0xff]  ;;  %v1081_v26 = vld [vmem:[#allocation15] ss:$0 sm:$0xff]  ;;  %p1586_p12 = scmp.ne.s32.totalorder %s2118_s13, %s1585_s29  ;;  %s1689_s15 = smov [#allocation19]  }
 0x116   : > { %716 = vmatprep.subr.bf16.mxu1 %v1686_v27  ;;  %v1168_v20 = vpack.c.bf16 %v795_v19, %v794_v18  ;;  %s1589_s19 = sshll.u32 %s1689_s15, 4  ;;  %s1590_s19 = int_to_ptr.vmem [resolvable:$false] %s1589_s19 }
 0x117   : > { %p1587_p13 = pnand %p1586_p12, %p2205_p1  ;;  %s1591_s23 = scalar_lea.vmem %s1590_s19, 32 }
 0x118   : > { %s2116_s20 = scalar_lea.hbm %s2204_s26, %s1082_s25  ;;  %p1592_p2 = scmp.lt.s32.totalorder %s2118_s13, %s1590_s19 }
 0x119   : > { %717 = vmatpush1.bf16.msra.mxu1 %v1316_v29  ;;  %p1588_p0 = pneg %p1587_p13  ;;  %p1593_p8 = scmp.lt.s32.totalorder %s1591_s23, %s1585_s29 }
 0x11a   : > { %718 = vmatprep.subr.bf16.mxu1 %v1686_v27 }
 0x11b   : > { %p1594_p4 = por %p1593_p8, %p1592_p2 }
 0x11d   : > { %719 = vmatpush1.bf16.msra.mxu1 %v1317_v30  ;;  %p1595_p10 = pnand %p1594_p4, %p1588_p0 }
 0x11e   : > { %720 = vmatprep.subr.bf16.mxu1 %v1686_v27 }
 0x121   : > { %721 = vmatpush1.bf16.msra.mxu1 %v1318_v31 }
 0x122   : > { %722 = vmatprep.subr.bf16.mxu1 %v1686_v27 }
 0x125   : > { %723 = vmatpush1.bf16.msra.mxu1 %v1319_v32 }
 0x126   : > { %724 = vmatprep.subr.bf16.mxu1 %v1686_v27 }
 0x129   : > { %725 = vmatpush1.bf16.msra.mxu1 %v1320_v33 }
 0x12a   : > { %726 = vmatprep.subr.bf16.mxu1 %v1686_v27 }
 0x12d   : > { %727 = vmatpush1.bf16.msra.mxu1 %v1321_v34 }
 0x12e   : > { %728 = vmatprep.subr.bf16.mxu1 %v1686_v27 }
 0x131   : > { %729 = vmatpush1.bf16.msra.mxu1 %v1322_v35 }
 0x132   : > { %730 = vmatprep.subr.bf16.mxu1 %v1686_v27 }
 0x135   : > { %731 = vmatpush1.bf16.msra.mxu1 %v1323_v36 }
 0x136   : > { %732 = vmatprep.subr.bf16.mxu1 %v1686_v27 }
 0x139   : > { %733 = vmatpush1.bf16.msra.mxu1 %v1324_v37 }
 0x13a   : > { %734 = vmatprep.subr.bf16.mxu1 %v1686_v27 }
 0x13d   : > { %735 = vmatpush1.bf16.msra.mxu1 %v1325_v38 }
 0x17d   : > { %v498_v22 = vpop.permute.xlu0 %497 }
 0x17e   : > { %v505_v23 = vsel %vm502_vm6, %v490_v21, %v498_v22  ;;  %v796_v21 = vld [vmem:[#allocation16 + $0x70] sm:$0xff]  ;;  %v797_v22 = vld [vmem:[#allocation16 + $0x78] sm:$0xff] }
 0x185   : > { %v501_v24 = vpop.permute.xlu0 %500 }
 0x186   : > { %v508_v25 = vsel %vm506_vm7, %v505_v23, %v501_v24  ;;  %v1171_v23 = vpack.c.bf16 %v797_v22, %v796_v21  ;;  %v1080_v24 = vld [vmem:[#allocation13] ss:$0 sm:$0xff] }
 0x187   : > { %1111 = vmatmul.mubr.msk.bf16.vlgmr.msra.gmra.mrb[0].mxu0 %vm521_vm8, %v508_v25 }
 0x188   : > { %1146 = vmatprep.mubr.msk.f32.mxu0 %vm1683_vm0, %v1682_v1  ;;  %v1150_v1 = vpack.c.bf16 %v783_v0, %v782_v63 }
 0x18a   : > { %1151 = vmatpush3.bf16.msra.mxu0 %v1150_v1 }
 0x18b   : > { %1152 = vmatprep.subr.bf16.mxu0 %v1688_v3 }
 0x18e   : > { %1154 = vmatpush3.bf16.msra.mxu0 %v1153_v6 }
 0x18f   : > { %1155 = vmatprep.subr.bf16.mxu0 %v1688_v3 }
 0x192   : > { %1157 = vmatpush3.bf16.msra.mxu0 %v1156_v8 }
 0x193   : > { %1158 = vmatprep.subr.bf16.mxu0 %v1688_v3 }
 0x196   : > { %1160 = vmatpush3.bf16.msra.mxu0 %v1159_v11 }
 0x197   : > { %1161 = vmatprep.subr.bf16.mxu0 %v1688_v3 }
 0x19a   : > { %1163 = vmatpush3.bf16.msra.mxu0 %v1162_v14 }
 0x19b   : > { %1164 = vmatprep.subr.bf16.mxu0 %v1688_v3 }
 0x19e   : > { %1166 = vmatpush3.bf16.msra.mxu0 %v1165_v17 }
 0x19f   : > { %1167 = vmatprep.subr.bf16.mxu0 %v1688_v3 }
 0x1a2   : > { %1169 = vmatpush3.bf16.msra.mxu0 %v1168_v20 }
 0x1a3   : > { %1170 = vmatprep.subr.bf16.mxu0 %v1688_v3 }
 0x1a6   : > { %1172 = vmatpush3.bf16.msra.mxu0 %v1171_v23 }
 0x25a   : > { %v562_v40 = vpop.f32.mrb[0].mxu0 }
 0x25b   : > { %v576_v42 = vmul.f32 %v1065_v39, %v562_v40  ;;  %v1112_v43 = vpop.f32.mrb[1].mxu0 }
 0x25c   : > { %v565_v44 = vpop.f32.mrb[2].mxu0 }
 0x25d   : > { %v585_v45 = vadd.f32 %v1066_v41, %v576_v42  ;;  %v577_v46 = vmul.f32 %v1065_v39, %v565_v44  ;;  %v1113_v47 = vpop.f32.mrb[3].mxu0  ;;  %v798_v44 = vld [vmem:[#allocation18] sm:$0x1] }
 0x25f   : > { %v587_v48 = vmax.f32 %v585_v45, 0.0  ;;  %v586_v49 = vadd.f32 %v1066_v41, %v577_v46 }
 0x261   : > { %590 = vst.msk [vmem:[#allocation2] sm:$0xff] %vm589_vm9, %v587_v48  ;;  %v588_v50 = vmax.f32 %v586_v49, 0.0 }
 0x263   : > { %591 = vst.msk [vmem:[#allocation2 + $0x8] sm:$0xff] %vm589_vm9, %v588_v50 }
 0x26a   : > { %v592_v51 = vld [vmem:[#allocation2] ss:$2 sm:$0xff]  ;;  %v594_v52 = vld [vmem:[#allocation2 + $0x1] ss:$2 sm:$0xff] }
 0x26b   : > { %v595_v53 = vmax.f32 %v592_v51, %v594_v52 }
 0x26d   : > { %v604_v54 = vpack.c.bf16 %v595_v53, %v595_v53  ;;  %v599_v55 = vrot.slane %v595_v53, 1  ;;  %v596_v58 = vrot.slane %v595_v53, 7 }
 0x26f   : > { %607 = vrot.lane.b32.xlu1 %v604_v54, %s1687_s16  ;;  %v602_v56 = vsel %vm598_vm10, 0.0, %v599_v55  ;;  %v597_v59 = vsel %vm464_vm2, 0.0, %v596_v58 }
 0x270   : > { %v605_v57 = vpack.c.bf16 %v602_v56, %v602_v56  ;;  %v603_v60 = vpack.c.bf16 %v597_v59, %v597_v59 }
 0x272   : > { %1079 = vmatprep.mubr.msk.bf16.mxu1 %vm589_vm9, %v605_v57 }
 0x2e1   : > { %v608_v61 = vpop.permute.xlu1 %607 }
 0x2e2   : > { %v611_v62 = vsel %vm589_vm9, %v603_v60, %v608_v61 }
 0x2e3   : > { %745 = vmatmul.mubr.bf16.vlgmr.msra.gmra.mrb[0].mxu1 %v611_v62 }
 0x3b6   : > { %v746_v25 = vpop.f32.mrb[0].mxu1 }
 0x3b7   : > { %v759_v27 = vmul.f32 %v1080_v24, %v746_v25  ;;  %v748_v28 = vpop.f32.mrb[1].mxu1 }
 0x3b8   : > { %v749_v29 = vpop.f32.mrb[2].mxu1 }
 0x3b9   : > { %v767_v30 = vadd.f32 %v1081_v26, %v759_v27  ;;  %v750_v31 = vpop.f32.mrb[3].mxu1 }
 0x3bb   : > { %v768_v32 = vmax.f32 %v767_v30, 0.0 }
 0x3bd   : > { %769 = vst [vmem:[#allocation3] sm:$0xff] %v768_v32 }
 0x3c4   : > { %v770_v33 = vld [vmem:[#allocation3] ss:$2 sm:$0xf]  ;;  %v772_v34 = vld [vmem:[#allocation3 + $0x1] ss:$2 sm:$0xf] }
 0x3c5   : > { %v773_v35 = vmax.f32 %v770_v33, %v772_v34 }
 0x3c7   : > { %v774_v36 = vsel %vm524_vm3, %v773_v35, 0.0 }
 0x3c8   : > { %v775_v37 = vrot.slane %v774_v36, 4 }
 0x3ca   : > { %v776_v38 = vadd.f32 %v775_v37, %v774_v36 }
 0x3cc   : > { %v777_v39 = vrot.slane %v776_v38, 2 }
 0x3ce   : > { %v778_v40 = vadd.f32 %v777_v39, %v776_v38 }
 0x3d0   : > { %v779_v41 = vrot.slane %v778_v40, 1 }
 0x3d2   : > { %v780_v42 = vadd.f32 %v779_v41, %v778_v40 }
 0x3d4   : > { %v781_v43 = vmul.f32 0.25, %v780_v42 }
 0x3d6   : > { %1147 = vmatmul.mubr.f32.vlgmr.msra.gmra.mrb[4].mxu0 %v781_v43 }
 0x4a9   : > { %v865_v45 = vpop.f32.mrb[4].mxu0 }
 0x4aa   : > { %v866_v46 = vadd.f32 %v865_v45, %v798_v44  ;;  %v1148_v47 = vpop.f32.mrb[5].mxu0 }
 0x4ac   : > { %v870_v48 = vsel %vm869_vm11, %v866_v46, -inf }
 0x4ad   : > { %871 = vmax.xlane.f32.xlu1 %v870_v48 }
 0x53a   : > { %v872_v49 = vpop.xlane.xlu1 %871 }
 0x53b   : > { %v873_v50 = vsub.f32 %v866_v46, %v872_v49 }
 0x53d   : > { %v874_v51 = vmul.f32 1.442695, %v873_v50 }
 0x53f   : > { %1327 = vpow2.f32 %v874_v51 }
 0x549   : > { %v1328_v52 = vpop.eup %1327 }
 0x54a   : > { %v876_v53 = vsel %vm869_vm11, %v1328_v52, 0.0 }
 0x54b   : > { %877 = vadd.xlane.f32.xlu0 %v876_v53 }
 0x5d8   : > { %v878_v54 = vpop.xlane.xlu0 %877 }
 0x5d9   : > { %1329 = vrcp.f32 %v878_v54 }
 0x5e3   : > { %v1330_v55 = vpop.eup %1329 }
 0x5e4   : > { %v880_v56 = vmul.f32 %v1330_v55, %v1328_v52 }
 0x5e6   : > { %881 = vst.msk [vmem:[%s455_s9] sm:$0x1] %vm869_vm11, %v880_v56 }
 0x5e7   : > { %1598 = shalt.err (!%p1595_p10)
}
 0x5e8   : > { %s1599_s28 = scalar_lea.hbm %s2116_s20, 16  ;;  %s1603_s16 = scalar_lea.hbm %s2204_s26, 32 }
 0x5e9   : > { %p1600_p11 = scmp.ne.s32.totalorder %s2116_s20, %s1599_s28  ;;  %p1604_p7 = scmp.lt.u32.totalorder %s2116_s20, %s2204_s26 }
 0x5ea   : > { %p1605_p6 = scmp.lt.u32.totalorder %s1603_s16, %s1599_s28  ;;  %p1607_p12 = scmp.lt.u32.totalorder %s1599_s28, %s2116_s20 }
 0x5eb   : > { %p1601_p3 = pnand %p1600_p11, %p2205_p1 }
 0x5ec   : > { %p1606_p9 = por %p1605_p6, %p1604_p7 }
 0x5ed   : > { %p1602_p5 = pneg %p1601_p3 }
 0x5ee   : > { %p1608_p13 = por %p1607_p12, %p1606_p9 }
 0x5f0   : > { %p1609_p0 = pnand %p1608_p13, %p1602_p5 }
 0x5f2   : > { %1612 = shalt.err (!%p1609_p0)
}
 0x5f3   : > { %1207 = dma.vmem_to_hbm [thread:$0]  (%p2205_p1), %s2118_s13, 16, %s2116_s20, %s883_s18  }
 0x5f4 PF: > { %s907_s22 = sand.u32 1, %s1655_s30   ;;  %p2206_p2 = scmp.ne.s32.totalorder %s2193_s17, 0 }
 0x5f5   : > { %p2207_p8 = scmp.ge.s32.totalorder %s1667_s12, 2  ;;  %s908_s21 = scalar_lea.sflag [#allocation6], %s907_s22 }
 0x5f7   : > { %p1239_p4 = pnand %p2207_p8, %p2206_p2 }
 0x5f9   : > { %1650 = dma.done.wait (!%p1239_p4), %s908_s21, 16  }
 0x5fa   : > { %1652 = vsyncadd (!%p1239_p4), %s908_s21, 4294967280  ;;  %p26_p10 = scmp.ge.s32.totalorder %s1975_s27, 4   ;;  %s2208_s30 = smov %s1659_s10 }
 0x5fb   : > { %s2209_s10 = smov %s1663_s11  ;;  %s2210_s11 = smov %s1986_s24 }
 0x5fc   : > { %s2211_s12 = smov %s1975_s27  ;;  %28 = sbr.rel (!%p26_p10) target bundleno = 13 (0xd), region = 135 }
 0x603   :  { %912 = vsyncpa [#allocation5], 1 }
 0x604   :  { %914 = vsyncpa [#allocation5 + $0x1], 1 }
 0x605   :  { %915 = vsyncpa [#allocation8], 1 }
 0x606   :  { %916 = vsyncpa [#allocation11], 1 }
 0x607   :  { %917 = vsyncpa [#allocation14], 1 }
 0x608   :  { %918 = vsyncpa [#allocation17], 1 }
 0x609   :  { %919 = vsyncpa [#allocation6], 1 }
 0x60a   :  { %921 = vsyncpa [#allocation6 + $0x1], 1 }

</bundles_post_ra>
